<compile_context>
chip_gen: v7x
topology: tpu7x:2x2x1
jax: 0.10.0
libtpu: 0.0.40
codegen_flags: <defaults>
</compile_context>

<pallas_src>
import jax
import jax.numpy as jnp
from jax.experimental import pallas as pl
from jax.experimental.pallas import tpu as pltpu


LANE = 128
SUBLANE = 8


def _round_up(n, m):
    return ((n + m - 1) // m) * m


def _pad2(a, rows, cols):
    pr = rows - a.shape[0]
    pc = cols - a.shape[1]
    if pr == 0 and pc == 0:
        return a
    return jnp.pad(a, ((0, pr), (0, pc)))


def _mlp_kernel(xw_ref, w1_ref, b1_ref, w2_ref, b2_ref, w3_ref, b3_ref, out_ref):
    # fc1 + ReLU. torch.cat((x, w), 1) was fused into the wrapper's pad/cast, so this
    # is one MXU dot over the fused contraction dim (zero padding is exact math).
    h1 = jnp.dot(xw_ref[...], w1_ref[...], preferred_element_type=jnp.float32)
    h1 = jnp.maximum(h1 + b1_ref[...], 0.0)

    # fc2 + ReLU (bf16 matmul operands, f32 accumulate / elementwise).
    h2 = jnp.dot(h1.astype(w2_ref.dtype), w2_ref[...],
                 preferred_element_type=jnp.float32) + b2_ref[...]
    h2 = jnp.maximum(h2, 0.0)

    # fc3 (no activation). W3 keeps its true (narrow) output width, so the store is
    # exactly num_classes lanes -- no padded f32 writeback.
    out = jnp.dot(h2.astype(w3_ref.dtype), w3_ref[...],
                  preferred_element_type=jnp.float32) + b3_ref[...]
    out_ref[...] = out.astype(out_ref.dtype)


def prepare_params(params, input_size, user_vec_len, compute_dtype=jnp.bfloat16):
    """Pad + cast the weights/biases ONCE (hoisted out of the per-call forward path).

    params: dict W1,b1,W2,b2,W3,b3 with W* stored as [in_features, out_features].
    """
    cat = input_size + user_vec_len
    assert params["W1"].shape[0] == cat
    hidden = params["W1"].shape[1]
    num_classes = params["W3"].shape[1]

    cat_p = _round_up(cat, LANE)   # fused (x|w) contraction dim, lane aligned
    h_p = _round_up(hidden, LANE)  # hidden dim, lane aligned (exact: ReLU(0)=0)

    return {
        "W1": _pad2(params["W1"], cat_p, h_p).astype(compute_dtype),
        "W2": _pad2(params["W2"], h_p, h_p).astype(compute_dtype),
        # Output width stays at the true num_classes -> narrow in-kernel store.
        "W3": _pad2(params["W3"], h_p, num_classes).astype(compute_dtype),
        "b1": _pad2(params["b1"].reshape(1, -1), 1, h_p).astype(jnp.float32),
        "b2": _pad2(params["b2"].reshape(1, -1), 1, h_p).astype(jnp.float32),
        "b3": params["b3"].reshape(1, -1).astype(jnp.float32),
    }


def neural_net_forward(x, w, prepared, *, block_batch=None):
    """Forward pass of NeuralNet.

    x: [batch, input_size], w: [batch, user_vec_len], prepared: prepare_params(...) dict.
    Returns [batch, num_classes] float32.
    """
    batch = x.shape[0]
    cat = x.shape[1] + w.shape[1]

    W1_p, W2_p, W3_p = prepared["W1"], prepared["W2"], prepared["W3"]
    b1_p, b2_p, b3_p = prepared["b1"], prepared["b2"], prepared["b3"]
    cat_p, h_p = W1_p.shape
    num_classes = W3_p.shape[1]
    compute_dtype = W1_p.dtype
    assert cat <= cat_p

    # ---- batch tile ------------------------------------------------------------
    # Large tiles amortize the ~0.35us/step grid overhead, but cap the tile at half
    # the batch (when batch allows) so the "parallel" grid axis has >=2 steps for
    # v7x's 2 TensorCores. Multiples of 16 keep bf16 operands fully sublane-packed.
    if block_batch is None:
        block_batch = 1024
    half_batch = _round_up(max(-(-batch // 2), 16), 16)
    tb = max(min(_round_up(block_batch, 16), half_batch), 16)
    b_p = _round_up(batch, tb)
    grid = (b_p // tb,)

    # Fuse the concat into the same pad/cast pass that already materializes the padded
    # bf16 input (no separate x / w operands, half the input DMA bytes).
    xw_p = _pad2(jnp.concatenate([x, w], axis=1), b_p, cat_p).astype(compute_dtype)

    # ---- VMEM budget / cost hint -------------------------------------------------
    def tile_bytes(rows, cols, itemsize):
        return _round_up(rows, SUBLANE) * _round_up(cols, LANE) * itemsize

    weight_bytes = (tile_bytes(cat_p, h_p, 2) + tile_bytes(h_p, h_p, 2)
                    + tile_bytes(h_p, num_classes, 2)
                    + 2 * tile_bytes(1, h_p, 4) + tile_bytes(1, num_classes, 4))
    act_bytes = 2 * tile_bytes(tb, cat_p, 2) + 2 * tile_bytes(tb, num_classes, 4)
    vmem_limit = min(int(1.5 * (weight_bytes + act_bytes)) + (2 << 20), 64 << 20)

    flops = 2 * b_p * (cat_p * h_p + h_p * h_p + h_p * num_classes)
    bytes_accessed = (int(xw_p.size) * xw_p.dtype.itemsize
                      + sum(int(a.size) * a.dtype.itemsize
                            for a in (W1_p, W2_p, W3_p, b1_p, b2_p, b3_p))
                      + b_p * num_classes * 4)
    cost = pl.CostEstimate(flops=int(flops), transcendentals=0,
                           bytes_accessed=int(bytes_accessed))

    # ---- specs ---------------------------------------------------------------------
    vmem = pltpu.MemorySpace.VMEM

    def batch_spec(cols):
        return pl.BlockSpec((tb, cols), lambda i: (i, 0), memory_space=vmem)

    def resident(shape):
        # Constant index_map -> tile never changes across grid steps; single-buffer it.
        return pl.BlockSpec(shape, lambda i: (0, 0), memory_space=vmem,
                            pipeline_mode=pl.Buffered(1))

    out_p = pl.pallas_call(
        _mlp_kernel,
        out_shape=jax.ShapeDtypeStruct((b_p, num_classes), jnp.float32),
        grid=grid,
        in_specs=[
            batch_spec(cat_p),                 # fused [x | w] activation tile
            resident((cat_p, h_p)),            # W1
            resident((1, h_p)),                # b1
            resident((h_p, h_p)),              # W2
            resident((1, h_p)),                # b2
            resident((h_p, num_classes)),      # W3 (narrow output width)
            resident((1, num_classes)),        # b3
        ],
        out_specs=pl.BlockSpec((tb, num_classes), lambda i: (i, 0),
                               memory_space=vmem),
        compiler_params=pltpu.CompilerParams(
            dimension_semantics=("parallel",),
            vmem_limit_bytes=vmem_limit),
        cost_estimate=cost,
    )(xw_p, W1_p, b1_p, W2_p, b2_p, W3_p, b3_p)

    # Only slice if batch padding was actually added (avoid a gratuitous extra pass).
    return out_p if b_p == batch else out_p[:batch]


def init_params(key, input_size, hidden_size, user_vec_len, num_classes):
    """Deterministic init mimicking PyTorch nn.Linear (uniform +/- 1/sqrt(fan_in)).
       Weights stored as [in_features, out_features]."""
    def linear(k, fan_in, fan_out):
        kw, kb = jax.random.split(k)
        bound = 1.0 / jnp.sqrt(fan_in)
        W = jax.random.uniform(kw, (fan_in, fan_out), jnp.float32, -bound, bound)
        b = jax.random.uniform(kb, (1, fan_out), jnp.float32, -bound, bound)
        return W, b

    k1, k2, k3 = jax.random.split(key, 3)
    W1, b1 = linear(k1, input_size + user_vec_len, hidden_size)
    W2, b2 = linear(k2, hidden_size, hidden_size)
    W3, b3 = linear(k3, hidden_size, num_classes)
    return {"W1": W1, "b1": b1, "W2": W2, "b2": b2, "W3": W3, "b3": b3}


def reference_forward(x, w, params):
    catt = jnp.concatenate([x, w], axis=1)
    h1 = jnp.maximum(catt @ params["W1"] + params["b1"], 0.0)
    h2 = jnp.maximum(h1 @ params["W2"] + params["b2"], 0.0)
    return h2 @ params["W3"] + params["b3"]


if __name__ == "__main__":
    # Small shapes consistent with the module's forward:
    # x: [batch, input_size], w: [batch, user_vec_len], out: [batch, num_classes]
    batch = 64
    input_size = 64
    hidden_size = 32
    user_vec_len = 8
    num_classes = user_vec_len  # as in the module: num_classes = user_vec_len

    key = jax.random.PRNGKey(0)
    kx, kw, kp = jax.random.split(key, 3)
    x = jax.random.normal(kx, (batch, input_size), jnp.float32)
    w = jax.random.normal(kw, (batch, user_vec_len), jnp.float32)
    params = init_params(kp, input_size, hidden_size, user_vec_len, num_classes)

    # Weights padded + cast once, reused across forward calls.
    prepared = prepare_params(params, input_size, user_vec_len)
    ref = reference_forward(x, w, params)

    # block_batch=16 -> 4 pipelined grid steps even at toy size.
    out = jax.block_until_ready(neural_net_forward(x, w, prepared, block_batch=16))
    assert out.shape == (batch, num_classes)
    # bf16 matmul operands with f32 accumulation -> compare vs f32 ref with loose tol.
    assert jnp.allclose(out, ref, atol=5e-2, rtol=5e-2), "mismatch vs JAX reference"

    # Default tiling path (tb capped at half the batch -> 2 grid steps).
    out2 = jax.block_until_ready(neural_net_forward(x, w, prepared))
    assert out2.shape == (batch, num_classes)
    assert jnp.allclose(out2, ref, atol=5e-2, rtol=5e-2), "mismatch (default tiling)"

    print("KERNEL_OK")
</pallas_src>

<mosaic_0001>
module attributes {stable_mosaic.version = 11 : i64} {
  func.func @_mlp_kernel(%arg0: i32, %arg1: memref<16x128xbf16, #tpu.memory_space<vmem>>, %arg2: memref<128x128xbf16, #tpu.memory_space<vmem>>, %arg3: memref<1x128xf32, #tpu.memory_space<vmem>>, %arg4: memref<128x128xbf16, #tpu.memory_space<vmem>>, %arg5: memref<1x128xf32, #tpu.memory_space<vmem>>, %arg6: memref<128x8xbf16, #tpu.memory_space<vmem>>, %arg7: memref<1x8xf32, #tpu.memory_space<vmem>>, %arg8: memref<16x8xf32, #tpu.memory_space<vmem>>) attributes {dimension_semantics = [#tpu.dimension_semantics<parallel>], iteration_bounds = array<i64: 4>, scalar_prefetch = 0 : i64, scratch_operands = 0 : i64, tpu.core_type = #tpu.core_type<tc>, window_params = [{transform_indices = @transform_0, window_bounds = array<i64: 16, 128>}, {pipeline_mode = #tpu.pipeline_mode<synchronous>, transform_indices = @transform_1, window_bounds = array<i64: 128, 128>}, {pipeline_mode = #tpu.pipeline_mode<synchronous>, transform_indices = @transform_2, window_bounds = array<i64: 1, 128>}, {pipeline_mode = #tpu.pipeline_mode<synchronous>, transform_indices = @transform_3, window_bounds = array<i64: 128, 128>}, {pipeline_mode = #tpu.pipeline_mode<synchronous>, transform_indices = @transform_4, window_bounds = array<i64: 1, 128>}, {pipeline_mode = #tpu.pipeline_mode<synchronous>, transform_indices = @transform_5, window_bounds = array<i64: 128, 8>}, {pipeline_mode = #tpu.pipeline_mode<synchronous>, transform_indices = @transform_6, window_bounds = array<i64: 1, 8>}, {transform_indices = @transform_7, window_bounds = array<i64: 16, 8>}]} {
    %c0 = arith.constant 0 : index
    %c0_0 = arith.constant 0 : index
    %0 = vector.load %arg1[%c0, %c0_0] : memref<16x128xbf16, #tpu.memory_space<vmem>>, vector<16x128xbf16>
    %c0_1 = arith.constant 0 : index
    %c0_2 = arith.constant 0 : index
    %1 = vector.load %arg2[%c0_1, %c0_2] : memref<128x128xbf16, #tpu.memory_space<vmem>>, vector<128x128xbf16>
    %cst = arith.constant dense<0.000000e+00> : vector<16x128xf32>
    %2 = tpu.matmul %0, %1, %cst {dimension_numbers = #tpu.dot_dimension_numbers<[1], [0], [0], [1], [0, 0, 1, 1], [], []>} : vector<16x128xbf16>, vector<128x128xbf16>, vector<16x128xf32> -> vector<16x128xf32>
    %c0_3 = arith.constant 0 : index
    %c0_4 = arith.constant 0 : index
    %3 = vector.load %arg3[%c0_3, %c0_4] : memref<1x128xf32, #tpu.memory_space<vmem>>, vector<1x128xf32>
    %4 = vector.broadcast %3 : vector<1x128xf32> to vector<16x128xf32>
    %5 = arith.addf %2, %4 : vector<16x128xf32>
    %cst_5 = arith.constant 0.000000e+00 : f32
    %6 = vector.broadcast %cst_5 : f32 to vector<16x128xf32>
    %7 = arith.maximumf %5, %6 : vector<16x128xf32>
    %8 = arith.truncf %7 : vector<16x128xf32> to vector<16x128xbf16>
    %c0_6 = arith.constant 0 : index
    %c0_7 = arith.constant 0 : index
    %9 = vector.load %arg4[%c0_6, %c0_7] : memref<128x128xbf16, #tpu.memory_space<vmem>>, vector<128x128xbf16>
    %cst_8 = arith.constant dense<0.000000e+00> : vector<16x128xf32>
    %10 = tpu.matmul %8, %9, %cst_8 {dimension_numbers = #tpu.dot_dimension_numbers<[1], [0], [0], [1], [0, 0, 1, 1], [], []>} : vector<16x128xbf16>, vector<128x128xbf16>, vector<16x128xf32> -> vector<16x128xf32>
    %c0_9 = arith.constant 0 : index
    %c0_10 = arith.constant 0 : index
    %11 = vector.load %arg5[%c0_9, %c0_10] : memref<1x128xf32, #tpu.memory_space<vmem>>, vector<1x128xf32>
    %12 = vector.broadcast %11 : vector<1x128xf32> to vector<16x128xf32>
    %13 = arith.addf %10, %12 : vector<16x128xf32>
    %cst_11 = arith.constant 0.000000e+00 : f32
    %14 = vector.broadcast %cst_11 : f32 to vector<16x128xf32>
    %15 = arith.maximumf %13, %14 : vector<16x128xf32>
    %16 = arith.truncf %15 : vector<16x128xf32> to vector<16x128xbf16>
    %c0_12 = arith.constant 0 : index
    %c0_13 = arith.constant 0 : index
    %17 = vector.load %arg6[%c0_12, %c0_13] : memref<128x8xbf16, #tpu.memory_space<vmem>>, vector<128x8xbf16>
    %cst_14 = arith.constant dense<0.000000e+00> : vector<16x8xf32>
    %18 = tpu.matmul %16, %17, %cst_14 {dimension_numbers = #tpu.dot_dimension_numbers<[1], [0], [0], [1], [0, 0, 1, 1], [], []>} : vector<16x128xbf16>, vector<128x8xbf16>, vector<16x8xf32> -> vector<16x8xf32>
    %c0_15 = arith.constant 0 : index
    %c0_16 = arith.constant 0 : index
    %19 = vector.load %arg7[%c0_15, %c0_16] : memref<1x8xf32, #tpu.memory_space<vmem>>, vector<1x8xf32>
    %20 = vector.broadcast %19 : vector<1x8xf32> to vector<16x8xf32>
    %21 = arith.addf %18, %20 : vector<16x8xf32>
    %c0_17 = arith.constant 0 : index
    %c0_18 = arith.constant 0 : index
    %22 = vector.load %arg8[%c0_17, %c0_18] : memref<16x8xf32, #tpu.memory_space<vmem>>, vector<16x8xf32>
    tpu.vector_store %arg8[%c0_17, %c0_18], %21 {strides = array<i32>} : memref<16x8xf32, #tpu.memory_space<vmem>>, vector<16x8xf32>,
    return
  }
  func.func @transform_0(%arg0: i32) -> (i32, i32) {
    %c0_i32 = arith.constant 0 : i32
    %c0_i32_0 = arith.constant 0 : i32
    return %arg0, %c0_i32 : i32, i32
  }
  func.func @transform_1(%arg0: i32) -> (i32, i32) {
    %c0_i32 = arith.constant 0 : i32
    %c0_i32_0 = arith.constant 0 : i32
    %c0_i32_1 = arith.constant 0 : i32
    return %c0_i32, %c0_i32_0 : i32, i32
  }
  func.func @transform_2(%arg0: i32) -> (i32, i32) {
    %c0_i32 = arith.constant 0 : i32
    %c0_i32_0 = arith.constant 0 : i32
    %c0_i32_1 = arith.constant 0 : i32
    return %c0_i32, %c0_i32_0 : i32, i32
  }
  func.func @transform_3(%arg0: i32) -> (i32, i32) {
    %c0_i32 = arith.constant 0 : i32
    %c0_i32_0 = arith.constant 0 : i32
    %c0_i32_1 = arith.constant 0 : i32
    return %c0_i32, %c0_i32_0 : i32, i32
  }
  func.func @transform_4(%arg0: i32) -> (i32, i32) {
    %c0_i32 = arith.constant 0 : i32
    %c0_i32_0 = arith.constant 0 : i32
    %c0_i32_1 = arith.constant 0 : i32
    return %c0_i32, %c0_i32_0 : i32, i32
  }
  func.func @transform_5(%arg0: i32) -> (i32, i32) {
    %c0_i32 = arith.constant 0 : i32
    %c0_i32_0 = arith.constant 0 : i32
    %c0_i32_1 = arith.constant 0 : i32
    return %c0_i32, %c0_i32_0 : i32, i32
  }
  func.func @transform_6(%arg0: i32) -> (i32, i32) {
    %c0_i32 = arith.constant 0 : i32
    %c0_i32_0 = arith.constant 0 : i32
    %c0_i32_1 = arith.constant 0 : i32
    return %c0_i32, %c0_i32_0 : i32, i32
  }
  func.func @transform_7(%arg0: i32) -> (i32, i32) {
    %c0_i32 = arith.constant 0 : i32
    %c0_i32_0 = arith.constant 0 : i32
    return %arg0, %c0_i32 : i32, i32
  }
}

</mosaic_0001>

<bundles_post_ra>
// kernel: tpu_custom_call.1
= control target key start
LH: loop header
LB: loop body
LE: loop exit
PB: predicated region body
PF: predicated region fallthrough
CT: control target
= control target key end

     0   :  { %12 = vsyncpa [#allocation3], 0  ;;  %s1344_s0 = inlined_call_operand.hbm [shape: bf16[64,128], index: 0, kind: input, shape index: {}]   ;;  %s1345_s1 = inlined_call_operand.vmem [shape: bf16[128,128], index: 1, kind: input, shape index: {}]   ;;  %s1346_s2 = inlined_call_operand.vmem [shape: f32[1,128], index: 2, kind: input, shape index: {}]   ;;  %s1347_s3 = inlined_call_operand.hbm [shape: bf16[128,128], index: 3, kind: input, shape index: {}]   ;;  %s1348_s4 = inlined_call_operand.vmem [shape: f32[1,128], index: 4, kind: input, shape index: {}]   ;;  %s1349_s5 = inlined_call_operand.vmem [shape: bf16[128,8], index: 5, kind: input, shape index: {}]   ;;  %s1350_s6 = inlined_call_operand.vmem [shape: f32[1,8], index: 6, kind: input, shape index: {}]   ;;  %s1351_s7 = inlined_call_operand.vmem [shape: f32[64,8], index: 7, kind: output, shape index: {}]  }
   0x1   :  { %14 = vsyncpa [#allocation3 + $0x1], 0 }
   0x2   :  { %15 = vsyncpa [#allocation5], 0  ;;  %s1101_s24 = smov 0   ;;  %s1103_s25 = smov 0  }
   0x3   :  { %s1105_s26 = smov 0   ;;  %s1107_s27 = smov 0  }
   0x4 LB: > { %s747_s28 = sadd.s32 4294967295, %s1053_s27   ;;  %p41_p0 = scmp.ne.s32.totalorder %s1045_s25, %s1041_s24  ;;  %s1053_s27 = sphi %s1107_s27, %s1367_s27   ;;  %s1049_s26 = sphi %s1105_s26, %s1366_s26   ;;  %s1045_s25 = sphi %s1103_s25, %s1365_s25   ;;  %s1041_s24 = sphi %s1101_s24, %s1364_s24  }
   0x5   : > { %p1123_p1 = scmp.eq.s32.totalorder %s747_s28, 0  ;;  %p749_p2 = scmp.ge.s32.totalorder %s1053_s27, 1 }
   0x6   : > { %p204_p3 = scmp.lt.s32.totalorder %s1053_s27, 5  ;;  %s1055_s9 = smov [#allocation4]  }
   0x7   : > { %s1356_s29 = scalar_select %p1123_p1, 1, 0 }
   0x8   : > { %p1131_p4 = por %p1123_p1, %p41_p0  ;;  %p1135_p5 = pnand %p749_p2, %p204_p3 }
   0x9   : > { %s222_s10 = sshll.u32 %s1055_s9, 4  ;;  %s1148_s12 = sadd.s32 1, %s1053_s27   ;;  %s223_s10 = int_to_ptr.vmem [resolvable:$true] %s222_s10 }
   0xa   : > { %s1357_s30 = scalar_select %p1131_p4, 1, 0 }
   0xb   : > { %s1358_s8 = scalar_select %p1135_p5, 1, 0 }
   0xc   : > { %p884_p6 = pneg %p1135_p5  ;;  %s28_s13 = sadd.s32 1, %s1049_s26 }
   0xd   : > { %s25_s14 = ssub.s32 %s1053_s27, %s1148_s12  ;;  %s957_s17 = scalar_lea.hbm %s1347_s3, 1024 }
   0xe   : > { %p1143_p7 = pnand %p884_p6, %p1123_p1  ;;  %p958_p8 = scmp.ne.s32.totalorder %s1347_s3, %s957_s17 }
   0xf   : > { %p964_p12 = scmp.lt.u32.totalorder %s957_s17, %s1347_s3 }
  0x10   : > { %p959_p9 = pneg %p1143_p7 }
  0x12   : > { %p960_p10 = pnand %p959_p9, %p958_p8 }
  0x14   : > { %p961_p11 = pneg %p960_p10 }
  0x16   : > { %p966_p13 = pnand %p964_p12, %p961_p11 }
  0x18   : > { %969 = shalt.err (!%p966_p13)
}
  0x19   : > { %s970_s22 = scalar_lea.vmem %s223_s10, 1024  ;;  %p978_p6 = scmp.lt.s32.totalorder %s223_s10, %s223_s10 }
  0x1a   : > { %p971_p0 = scmp.ne.s32.totalorder %s223_s10, %s970_s22  ;;  %p979_p1 = scmp.lt.s32.totalorder %s970_s22, %s970_s22 }
  0x1c   : > { %p973_p2 = pnand %p971_p0, %p959_p9  ;;  %p980_p4 = por %p979_p1, %p978_p6 }
  0x1e   : > { %p974_p3 = pneg %p973_p2 }
  0x20   : > { %p981_p5 = pnand %p980_p4, %p974_p3 }
  0x22   : > { %984 = shalt.err (!%p981_p5)
}
  0x23   : > { %s1056_s23 = smov 64   ;;  %s1057_s24 = smov 4  }
  0x24   : > { %887 = dma.hbm_to_vmem [thread:$0]  (!%p1143_p7), %s1347_s3, 1024, %s223_s10, [#allocation5], %s1056_s23, %s1056_s23, %s1057_s24  }
  0x25   : > { %p26_p1 = scmp.eq.s32.totalorder %s25_s14, 0  ;;  %p35_p4 = scmp.ne.s32.totalorder %s1049_s26, %s1045_s25 }
  0x26   : > { %p36_p5 = scmp.eq.s32.totalorder %s1053_s27, 0  ;;  %p893_p8 = scmp.lt.s32.totalorder %s1053_s27, 4 }
  0x27   : > { %s1177_s16 = scalar_select %p26_p1, %s1049_s26, %s28_s13  }
  0x28   : > { %p37_p9 = por %p36_p5, %p35_p4  ;;  %s245_s17 = sand.u32 1, %s1049_s26  }
  0x29   : > { %s752_s18 = sshll.u32 %s245_s17, 3  ;;  %s790_s19 = sshll.u32 %s1053_s27, 7 }
  0x2a   : > { %s1184_s11 = scalar_lea.hbm %s1344_s0, %s790_s19  ;;  %s249_s10 = scalar_lea.vmem [#allocation2], %s752_s18 }
  0x2b   : > { %s256_s14 = sshll.u32 %s249_s10, 4  ;;  %p1188_p7 = pnand %p893_p8, %p37_p9  ;;  %s1186_s14 = int_to_ptr.vmem [resolvable:$true] %s256_s14 }
  0x2c   : > { %s1192_s22 = scalar_lea.sflag [#allocation3], %s245_s17  ;;  %s985_s9 = scalar_lea.hbm %s1184_s11, 128 }
  0x2d   : > { %p986_p10 = scmp.ne.s32.totalorder %s1184_s11, %s985_s9  ;;  %p987_p11 = pneg %p1188_p7 }
  0x2e   : > { %s990_s19 = scalar_lea.hbm %s1344_s0, 512  ;;  %p991_p0 = scmp.lt.u32.totalorder %s1184_s11, %s1344_s0 }
  0x2f   : > { %p988_p12 = pnand %p987_p11, %p986_p10  ;;  %p992_p2 = scmp.lt.u32.totalorder %s990_s19, %s985_s9 }
  0x30   : > { %p994_p6 = scmp.lt.u32.totalorder %s985_s9, %s1184_s11 }
  0x31   : > { %p989_p13 = pneg %p988_p12  ;;  %p993_p3 = por %p992_p2, %p991_p0 }
  0x33   : > { %p995_p1 = por %p994_p6, %p993_p3 }
  0x35   : > { %p996_p4 = pnand %p995_p1, %p989_p13 }
  0x37   : > { %999 = shalt.err (!%p996_p4)
}
  0x38   : > { %s1000_s17 = scalar_lea.vmem %s1186_s14, 128  ;;  %s1058_s10 = smov [#allocation2]  }
  0x39   : > { %p1001_p5 = scmp.ne.s32.totalorder %s1186_s14, %s1000_s17  ;;  %s1005_s15 = sshll.u32 %s1058_s10, 4  ;;  %s1006_s15 = int_to_ptr.vmem [resolvable:$false] %s1005_s15 }
  0x3a   : > { %s1007_s18 = scalar_lea.vmem %s1006_s15, 256  ;;  %p1008_p10 = scmp.lt.s32.totalorder %s1186_s14, %s1006_s15 }
  0x3b   : > { %p1003_p8 = pnand %p1001_p5, %p987_p11  ;;  %p1009_p12 = scmp.lt.s32.totalorder %s1007_s18, %s1000_s17 }
  0x3d   : > { %p1004_p9 = pneg %p1003_p8  ;;  %p1010_p0 = por %p1009_p12, %p1008_p10 }
  0x3f   : > { %p1011_p2 = pnand %p1010_p0, %p1004_p9 }
  0x41   : > { %1014 = shalt.err (!%p1011_p2)
}
  0x42   : > { %891 = dma.hbm_to_vmem [thread:$0]  (!%p1188_p7), %s1184_s11, 128, %s1186_s14, %s1192_s22, %s1056_s23, %s1056_s23, %s1057_s24  }
  0x43   : > { %p1361_p11 = scmp.ne.s32.totalorder %s1358_s8, 0 }
  0x44   : > { %s270_s9 = sand.u32 (!%p1361_p11), 1, %s1045_s25   ;;  %p1362_p13 = scmp.ne.s32.totalorder (!%p1361_p11), %s1357_s30, 0 }
  0x45   : > { %268 = sbr.rel (%p1361_p11) target bundleno = 771 (0x303), region = 48  ;;  %s1226_s19 = sshll.u32 (!%p1361_p11), %s270_s9, 3 }
  0x46   : > { %s271_s20 = scalar_lea.sflag (!%p1361_p11), [#allocation3], %s270_s9  ;;  %s274_s21 = scalar_lea.vmem (!%p1361_p11), [#allocation2], %s1226_s19 }
  0x4c   : > { %1032 = dma.done.wait (%p1362_p13), %s271_s20, 128  }
  0x4d   : > { %1034 = vsyncadd (%p1362_p13), %s271_s20, 4294967168  ;;  %p1363_p3 = scmp.ne.s32.totalorder %s1356_s29, 0 }
  0x4f   : > { %1036 = dma.done.wait (%p1363_p3), [#allocation5], 1024  }
  0x50   : > { %1038 = vsyncadd (%p1363_p3), [#allocation5], 4294966272  ;;  %v1059_v0 = vmov 0.0   ;;  %vm1060_vm0 = vmmov 0   ;;  %v932_v1 = vld [vmem:[%s1345_s1] sm:$0xff]   ;;  %v933_v2 = vld [vmem:[%s1345_s1 + $0x8] sm:$0xff]  }
  0x51   : > { %818 = vmatprep.subr.bf16.mxu0 %v1059_v0  ;;  %834 = vmatprep.mubr.msk.bf16.mxu0 %vm1060_vm0, %v1059_v0  ;;  %v934_v3 = vld [vmem:[%s1345_s1 + $0x10] sm:$0xff]   ;;  %v935_v5 = vld [vmem:[%s1345_s1 + $0x18] sm:$0xff]   ;;  %v936_v7 = vld [vmem:[%s1345_s1 + $0x20] sm:$0xff]   ;;  %vm667_vm1 = vcmask 64512  }
  0x52   : > { %838 = vmatprep.subr.bf16.mxu1 %v1059_v0  ;;  %854 = vmatprep.mubr.msk.bf16.mxu1 %vm1060_vm0, %v1059_v0  ;;  %v941_v4 = vld [vmem:[#allocation4] sm:$0xff]   ;;  %v942_v6 = vld [vmem:[#allocation4 + $0x8] sm:$0xff]   ;;  %v943_v8 = vld [vmem:[#allocation4 + $0x10] sm:$0xff]  }
  0x53   : > { %819 = vmatpush3.bf16.msra.mxu0 %v932_v1  ;;  %839 = vmatpush3.bf16.msra.mxu1 %v941_v4  ;;  %v937_v9 = vld [vmem:[%s1345_s1 + $0x28] sm:$0xff]   ;;  %v938_v11 = vld [vmem:[%s1345_s1 + $0x30] sm:$0xff]   ;;  %v939_v13 = vld [vmem:[%s1345_s1 + $0x38] sm:$0xff]  }
  0x54   : > { %820 = vmatprep.subr.bf16.mxu0 %v1059_v0  ;;  %840 = vmatprep.subr.bf16.mxu1 %v1059_v0  ;;  %v944_v10 = vld [vmem:[#allocation4 + $0x18] sm:$0xff]   ;;  %v945_v12 = vld [vmem:[#allocation4 + $0x20] sm:$0xff]   ;;  %v946_v14 = vld [vmem:[#allocation4 + $0x28] sm:$0xff]  }
  0x55   : > { %v940_v15 = vld [vmem:[%s274_s21] sm:$0xff]   ;;  %v951_v20 = vld [vmem:[%s1349_s5 + $0x10] sm:$0xff]   ;;  %v952_v21 = vld [vmem:[%s1349_s5 + $0x18] sm:$0xff]   ;;  %s758_s21 = sshll.u32 %s747_s28, 1 }
  0x56   : > { %v947_v16 = vld [vmem:[#allocation4 + $0x30] sm:$0xff]   ;;  %v948_v17 = vld [vmem:[#allocation4 + $0x38] sm:$0xff]   ;;  %v955_v34 = vld [vmem:[%s1349_s5 + $0x30] sm:$0xff]   ;;  %p311_p7 = scmp.lt.s32.totalorder %s758_s21, 7 }
  0x57   : > { %821 = vmatpush3.bf16.msra.mxu0 %v933_v2  ;;  %841 = vmatpush3.bf16.msra.mxu1 %v942_v6  ;;  %v949_v18 = vld [vmem:[%s1349_s5] sm:$0xff]   ;;  %v950_v19 = vld [vmem:[%s1349_s5 + $0x8] sm:$0xff]   ;;  %v956_v35 = vld [vmem:[%s1349_s5 + $0x38] sm:$0xff]  }
  0x58   : > { %822 = vmatprep.subr.bf16.mxu0 %v1059_v0  ;;  %842 = vmatprep.subr.bf16.mxu1 %v1059_v0  ;;  %v953_v22 = vld [vmem:[%s1349_s5 + $0x20] sm:$0xff]   ;;  %v954_v23 = vld [vmem:[%s1349_s5 + $0x28] sm:$0xff]   ;;  %s1369_s21 = smov (!%p311_p7, %s758_s21), 7 }
  0x59   : > { %v760_v24 = vld [vmem:[%s1346_s2] ss:$0 sm:$0xff]  ;;  %s759_s29 = sshll.u32 %s1369_s21, 3 }
  0x5a   : > { %v770_v36 = vld [vmem:[%s1348_s4] ss:$0 sm:$0xff]  ;;  %s314_s22 = scalar_lea.vmem %s1351_s7, %s759_s29 }
  0x5b   : > { %823 = vmatpush3.bf16.msra.mxu0 %v934_v3  ;;  %843 = vmatpush3.bf16.msra.mxu1 %v943_v8  ;;  %v779_v46 = vld [vmem:[%s1350_s6] ss:$0 sm:$0xff] }
  0x5c   : > { %824 = vmatprep.subr.bf16.mxu0 %v1059_v0  ;;  %844 = vmatprep.subr.bf16.mxu1 %v1059_v0 }
  0x5f   : > { %825 = vmatpush3.bf16.msra.mxu0 %v935_v5  ;;  %845 = vmatpush3.bf16.msra.mxu1 %v944_v10 }
  0x60   : > { %826 = vmatprep.subr.bf16.mxu0 %v1059_v0  ;;  %846 = vmatprep.subr.bf16.mxu1 %v1059_v0 }
  0x63   : > { %827 = vmatpush3.bf16.msra.mxu0 %v936_v7  ;;  %847 = vmatpush3.bf16.msra.mxu1 %v945_v12 }
  0x64   : > { %828 = vmatprep.subr.bf16.mxu0 %v1059_v0  ;;  %848 = vmatprep.subr.bf16.mxu1 %v1059_v0 }
  0x67   : > { %829 = vmatpush3.bf16.msra.mxu0 %v937_v9  ;;  %849 = vmatpush3.bf16.msra.mxu1 %v946_v14 }
  0x68   : > { %830 = vmatprep.subr.bf16.mxu0 %v1059_v0  ;;  %850 = vmatprep.subr.bf16.mxu1 %v1059_v0 }
  0x6b   : > { %831 = vmatpush3.bf16.msra.mxu0 %v938_v11  ;;  %851 = vmatpush3.bf16.msra.mxu1 %v947_v16 }
  0x6c   : > { %832 = vmatprep.subr.bf16.mxu0 %v1059_v0  ;;  %852 = vmatprep.subr.bf16.mxu1 %v1059_v0 }
  0x6f   : > { %833 = vmatpush3.bf16.msra.mxu0 %v939_v13  ;;  %853 = vmatpush3.bf16.msra.mxu1 %v948_v17 }
  0x70   : > { %858 = vmatprep.subr.bf16.mxu0 %v1059_v0 }
  0x72   : > { %835 = vmatmul.mubr.bf16.vlgmr.msra.gmra.mrb[0].mxu0 %v940_v15 }
  0x73   : > { %874 = vmatprep.mubr.msk.bf16.mxu0 %vm1060_vm0, %v1059_v0  ;;  %859 = vmatpush3.bf16.msra.mxu0 %v949_v18 }
  0x74   : > { %860 = vmatprep.subr.bf16.mxu0 %v1059_v0 }
  0x77   : > { %861 = vmatpush3.bf16.msra.mxu0 %v950_v19 }
  0x78   : > { %862 = vmatprep.subr.bf16.mxu0 %v1059_v0 }
  0x7b   : > { %863 = vmatpush3.bf16.msra.mxu0 %v951_v20 }
  0x7c   : > { %864 = vmatprep.subr.bf16.mxu0 %v1059_v0 }
  0x7f   : > { %865 = vmatpush3.bf16.msra.mxu0 %v952_v21 }
  0x80   : > { %866 = vmatprep.subr.bf16.mxu0 %v1059_v0 }
  0x83   : > { %867 = vmatpush3.bf16.msra.mxu0 %v953_v22 }
  0x84   : > { %868 = vmatprep.subr.bf16.mxu0 %v1059_v0 }
  0x87   : > { %869 = vmatpush3.bf16.msra.mxu0 %v954_v23 }
  0x88   : > { %870 = vmatprep.subr.bf16.mxu0 %v1059_v0 }
  0x8b   : > { %871 = vmatpush3.bf16.msra.mxu0 %v955_v34 }
  0x8c   : > { %872 = vmatprep.subr.bf16.mxu0 %v1059_v0 }
  0x8f   : > { %873 = vmatpush3.bf16.msra.mxu0 %v956_v35 }
 0x145   : > { %v430_v25 = vpop.f32.mrb[0].mxu0 }
 0x146   : > { %v431_v26 = vadd.f32 %v760_v24, %v430_v25  ;;  %v836_v27 = vpop.f32.mrb[1].mxu0 }
 0x147   : > { %v433_v28 = vpop.f32.mrb[2].mxu0 }
 0x148   : > { %v434_v29 = vadd.f32 %v760_v24, %v433_v28  ;;  %v837_v30 = vpop.f32.mrb[3].mxu0  ;;  %v437_v31 = vmax.f32 %v431_v26, 0.0 }
 0x14a   : > { %v438_v32 = vmax.f32 %v434_v29, 0.0 }
 0x14c   : > { %v439_v33 = vpack.c.bf16 %v438_v32, %v437_v31 }
 0x14e   : > { %855 = vmatmul.mubr.bf16.vlgmr.msra.gmra.mrb[0].mxu1 %v439_v33 }
 0x221   : > { %v545_v37 = vpop.f32.mrb[0].mxu1 }
 0x222   : > { %v546_v38 = vadd.f32 %v770_v36, %v545_v37  ;;  %v856_v39 = vpop.f32.mrb[1].mxu1 }
 0x223   : > { %v548_v40 = vpop.f32.mrb[2].mxu1 }
 0x224   : > { %v549_v41 = vadd.f32 %v770_v36, %v548_v40  ;;  %v857_v42 = vpop.f32.mrb[3].mxu1  ;;  %v552_v43 = vmax.f32 %v546_v38, 0.0 }
 0x226   : > { %v553_v44 = vmax.f32 %v549_v41, 0.0 }
 0x228   : > { %v554_v45 = vpack.c.bf16 %v553_v44, %v552_v43 }
 0x22a   : > { %875 = vmatmul.mubr.bf16.vlgmr.msra.gmra.mrb[4].mxu0 %v554_v45 }
 0x2fd   : > { %v660_v47 = vpop.f32.mrb[4].mxu0 }
 0x2fe   : > { %v661_v48 = vadd.f32 %v779_v46, %v660_v47  ;;  %v876_v49 = vpop.f32.mrb[5].mxu0 }
 0x2ff   : > { %v663_v50 = vpop.f32.mrb[6].mxu0 }
 0x300   : > { %668 = vst.msk [vmem:[%s314_s22] sm:$0xff] %vm667_vm1, %v661_v48  ;;  %v664_v51 = vadd.f32 %v779_v46, %v663_v50  ;;  %v877_v52 = vpop.f32.mrb[7].mxu0 }
 0x302   : > { %669 = vst.msk [vmem:[%s314_s22 + $0x8] sm:$0xff] %vm667_vm1, %v664_v51 }
 0x303 PF: > { %p18_p6 = scmp.ge.s32.totalorder %s1148_s12, 6   ;;  %s1364_s24 = smov %s1045_s25 }
 0x304   : > { %s1365_s25 = smov %s1049_s26  ;;  %s1366_s26 = smov %s1177_s16 }
 0x305   : > { %s1367_s27 = smov %s1148_s12  ;;  %20 = sbr.rel (!%p18_p6) target bundleno = 4 (0x4), region = 92 }
 0x30c   :  { %692 = vsyncpa [#allocation3], 1 }
 0x30d   :  { %694 = vsyncpa [#allocation3 + $0x1], 1 }
 0x30e   :  { %695 = vsyncpa [#allocation5], 1 }

</bundles_post_ra>
